<compile_context>
chip_gen: v6e
topology: v6e:2x2x1
jax: 0.10.0
libtpu: 0.0.40
codegen_flags: <defaults>
</compile_context>

<pallas_src>
import jax
import jax.numpy as jnp
from jax.experimental import pallas as pl
from jax.experimental.pallas import tpu as pltpu


def ca_kernel(x_ref, w1_ref, b1_ref, w2_ref, b2_ref, o_ref):
    # x_ref / o_ref : (C, HW)   one batch element (batch dim squeezed)
    # w1_ref: (C//2, C), b1_ref: (C//2, 1)
    # w2_ref: (C, C//2), b2_ref: (C, 1)
    x = x_ref[...]                                   # stays in input dtype
    hw = x.shape[-1]

    # AdaptiveAvgPool2d(1) / AdaptiveMaxPool2d(1): lane-axis reductions, f32 accum.
    avg = jnp.sum(x, axis=-1, keepdims=True, dtype=jnp.float32) * (1.0 / hw)  # (C, 1)
    mx = jnp.max(x, axis=-1, keepdims=True).astype(jnp.float32)               # (C, 1)

    w1 = w1_ref[...].astype(jnp.float32)             # (C//2, C)
    b1 = b1_ref[...].astype(jnp.float32)             # (C//2, 1)
    w2 = w2_ref[...].astype(jnp.float32)             # (C, C//2)
    b2 = b2_ref[...].astype(jnp.float32)             # (C, 1)

    # fus(avg) + fus(max) = W2 @ (relu(W1@avg + b1) + relu(W1@max + b1)) + 2*b2
    h_avg = jnp.maximum(
        jnp.dot(w1, avg, preferred_element_type=jnp.float32) + b1, 0.0)       # (C//2, 1)
    h_max = jnp.maximum(
        jnp.dot(w1, mx, preferred_element_type=jnp.float32) + b1, 0.0)        # (C//2, 1)
    o = jnp.dot(w2, h_avg + h_max, preferred_element_type=jnp.float32) + 2.0 * b2  # (C, 1)

    mask = jax.nn.sigmoid(o)                         # (C, 1)

    # Scale in the native dtype (no f32 copy of the big tile kept alive).
    o_ref[...] = (x * mask.astype(x.dtype)).astype(o_ref.dtype)


def ca_forward(x, w1, b1, w2, b2):
    """x: (N, C, H, W). Returns x * channel_attention_mask, same shape/dtype."""
    N, C, H, W = x.shape
    C2 = w1.shape[0]
    HW = H * W
    x_flat = x.reshape(N, C, HW)
    b1_2d = b1.reshape(C2, 1)
    b2_2d = b2.reshape(C, 1)

    # Scoped VMEM: in + out blocks, each double-buffered, plus weights/slack.
    elt = x.dtype.itemsize
    block_bytes = C * HW * elt
    weight_bytes = (C2 * C + C2 + C * C2 + C) * 4
    needed = 4 * block_bytes + 2 * weight_bytes + (2 << 20)
    vmem_limit = int(min(64 << 20, max(needed, 32 << 20)))

    out = pl.pallas_call(
        ca_kernel,
        out_shape=jax.ShapeDtypeStruct((N, C, HW), x.dtype),
        grid_spec=pltpu.PrefetchScalarGridSpec(
            num_scalar_prefetch=0,
            grid=(N,),
            in_specs=[
                pl.BlockSpec((None, C, HW), lambda n: (n, 0, 0)),
                pl.BlockSpec((C2, C), lambda n: (0, 0)),
                pl.BlockSpec((C2, 1), lambda n: (0, 0)),
                pl.BlockSpec((C, C2), lambda n: (0, 0)),
                pl.BlockSpec((C, 1), lambda n: (0, 0)),
            ],
            out_specs=pl.BlockSpec((None, C, HW), lambda n: (n, 0, 0)),
        ),
        compiler_params=pltpu.CompilerParams(
            dimension_semantics=("parallel",),
            vmem_limit_bytes=vmem_limit,
        ),
    )(x_flat, w1, b1_2d, w2, b2_2d)
    return out.reshape(N, C, H, W)


def ca_reference(x, w1, b1, w2, b2):
    """Pure-JAX reference mirroring the PyTorch CA module."""
    avg = jnp.mean(x, axis=(2, 3), keepdims=True)        # (N, C, 1, 1)
    mx = jnp.max(x, axis=(2, 3), keepdims=True)          # (N, C, 1, 1)

    def fus(v):  # v: (N, C, 1, 1)
        h = jnp.einsum("oc,ncab->noab", w1, v) + b1[None, :, None, None]
        h = jnp.maximum(h, 0.0)
        return jnp.einsum("oc,ncab->noab", w2, h) + b2[None, :, None, None]

    mask = jax.nn.sigmoid(fus(avg) + fus(mx))
    return x * mask


if __name__ == "__main__":
    N, C, H, W = 2, 4, 16, 16
    key = jax.random.PRNGKey(0)
    kx, k1, k2, k3, k4 = jax.random.split(key, 5)

    x = jax.random.normal(kx, (N, C, H, W), dtype=jnp.float32)
    # Conv2d(C, C//2, 1): weight (C//2, C), bias (C//2,)
    w1 = jax.random.normal(k1, (C // 2, C), dtype=jnp.float32) * 0.5
    b1 = jax.random.normal(k2, (C // 2,), dtype=jnp.float32) * 0.1
    # Conv2d(C//2, C, 1): weight (C, C//2), bias (C,)
    w2 = jax.random.normal(k3, (C, C // 2), dtype=jnp.float32) * 0.5
    b2 = jax.random.normal(k4, (C,), dtype=jnp.float32) * 0.1

    ca = jax.jit(ca_forward)
    out = ca(x, w1, b1, w2, b2)
    out = jax.block_until_ready(out)

    ref = ca_reference(x, w1, b1, w2, b2)
    assert out.shape == ref.shape and out.dtype == ref.dtype
    assert jnp.allclose(out, ref, atol=1e-5, rtol=1e-5), "mismatch vs reference"

    print("KERNEL_OK")
</pallas_src>

<mosaic_0001>
module attributes {stable_mosaic.version = 11 : i64} {
  func.func @ca_kernel(%arg0: i32, %arg1: memref<1x4x256xf32, #tpu.memory_space<vmem>>, %arg2: memref<2x4xf32, #tpu.memory_space<vmem>>, %arg3: memref<2x1xf32, #tpu.memory_space<vmem>>, %arg4: memref<4x2xf32, #tpu.memory_space<vmem>>, %arg5: memref<4x1xf32, #tpu.memory_space<vmem>>, %arg6: memref<1x4x256xf32, #tpu.memory_space<vmem>>) attributes {dimension_semantics = [#tpu.dimension_semantics<parallel>], iteration_bounds = array<i64: 2>, scalar_prefetch = 0 : i64, scratch_operands = 0 : i64, tpu.core_type = #tpu.core_type<tc>, window_params = [{transform_indices = @transform_0, window_bounds = array<i64: 1, 4, 256>}, {pipeline_mode = #tpu.pipeline_mode<synchronous>, transform_indices = @transform_1, window_bounds = array<i64: 2, 4>}, {pipeline_mode = #tpu.pipeline_mode<synchronous>, transform_indices = @transform_2, window_bounds = array<i64: 2, 1>}, {pipeline_mode = #tpu.pipeline_mode<synchronous>, transform_indices = @transform_3, window_bounds = array<i64: 4, 2>}, {pipeline_mode = #tpu.pipeline_mode<synchronous>, transform_indices = @transform_4, window_bounds = array<i64: 4, 1>}, {transform_indices = @transform_5, window_bounds = array<i64: 1, 4, 256>}]} {
    %c0 = arith.constant 0 : index
    %c0_0 = arith.constant 0 : index
    %c0_1 = arith.constant 0 : index
    %0 = vector.load %arg1[%c0, %c0_0, %c0_1] : memref<1x4x256xf32, #tpu.memory_space<vmem>>, vector<1x4x256xf32>
    %1 = vector.shape_cast %0 : vector<1x4x256xf32> to vector<4x256xf32>
    %cst = arith.constant dense<0.000000e+00> : vector<4xf32>
    %2 = vector.multi_reduction <add>, %1, %cst [1] : vector<4x256xf32> to vector<4xf32>
    %3 = vector.shape_cast %2 : vector<4xf32> to vector<4x1xf32>
    %cst_2 = arith.constant 3.906250e-03 : f32
    %4 = vector.broadcast %cst_2 : f32 to vector<4x1xf32>
    %5 = arith.mulf %3, %4 : vector<4x1xf32>
    %cst_3 = arith.constant dense<0xFF800000> : vector<4xf32>
    %6 = vector.multi_reduction <maximumf>, %1, %cst_3 [1] : vector<4x256xf32> to vector<4xf32>
    %7 = vector.shape_cast %6 : vector<4xf32> to vector<4x1xf32>
    %c0_4 = arith.constant 0 : index
    %c0_5 = arith.constant 0 : index
    %8 = vector.load %arg2[%c0_4, %c0_5] : memref<2x4xf32, #tpu.memory_space<vmem>>, vector<2x4xf32>
    %c0_6 = arith.constant 0 : index
    %c0_7 = arith.constant 0 : index
    %9 = vector.load %arg3[%c0_6, %c0_7] : memref<2x1xf32, #tpu.memory_space<vmem>>, vector<2x1xf32>
    %c0_8 = arith.constant 0 : index
    %c0_9 = arith.constant 0 : index
    %10 = vector.load %arg4[%c0_8, %c0_9] : memref<4x2xf32, #tpu.memory_space<vmem>>, vector<4x2xf32>
    %c0_10 = arith.constant 0 : index
    %c0_11 = arith.constant 0 : index
    %11 = vector.load %arg5[%c0_10, %c0_11] : memref<4x1xf32, #tpu.memory_space<vmem>>, vector<4x1xf32>
    %cst_12 = arith.constant dense<0.000000e+00> : vector<2x1xf32>
    %12 = tpu.matmul %8, %5, %cst_12 {dimension_numbers = #tpu.dot_dimension_numbers<[1], [0], [0], [1], [0, 0, 1, 1], [], []>} : vector<2x4xf32>, vector<4x1xf32>, vector<2x1xf32> -> vector<2x1xf32>
    %13 = arith.addf %12, %9 : vector<2x1xf32>
    %cst_13 = arith.constant 0.000000e+00 : f32
    %14 = vector.broadcast %cst_13 : f32 to vector<2x1xf32>
    %15 = arith.maximumf %13, %14 : vector<2x1xf32>
    %cst_14 = arith.constant dense<0.000000e+00> : vector<2x1xf32>
    %16 = tpu.matmul %8, %7, %cst_14 {dimension_numbers = #tpu.dot_dimension_numbers<[1], [0], [0], [1], [0, 0, 1, 1], [], []>} : vector<2x4xf32>, vector<4x1xf32>, vector<2x1xf32> -> vector<2x1xf32>
    %17 = arith.addf %16, %9 : vector<2x1xf32>
    %cst_15 = arith.constant 0.000000e+00 : f32
    %18 = vector.broadcast %cst_15 : f32 to vector<2x1xf32>
    %19 = arith.maximumf %17, %18 : vector<2x1xf32>
    %20 = arith.addf %15, %19 : vector<2x1xf32>
    %cst_16 = arith.constant dense<0.000000e+00> : vector<4x1xf32>
    %21 = tpu.matmul %10, %20, %cst_16 {dimension_numbers = #tpu.dot_dimension_numbers<[1], [0], [0], [1], [0, 0, 1, 1], [], []>} : vector<4x2xf32>, vector<2x1xf32>, vector<4x1xf32> -> vector<4x1xf32>
    %cst_17 = arith.constant 2.000000e+00 : f32
    %22 = vector.broadcast %cst_17 : f32 to vector<4x1xf32>
    %23 = arith.mulf %22, %11 : vector<4x1xf32>
    %24 = arith.addf %21, %23 : vector<4x1xf32>
    %25 = arith.negf %24 : vector<4x1xf32>
    %26 = math.exp %25 : vector<4x1xf32>
    %cst_18 = arith.constant 1.000000e+00 : f32
    %27 = vector.broadcast %cst_18 : f32 to vector<4x1xf32>
    %28 = arith.addf %27, %26 : vector<4x1xf32>
    %29 = arith.divf %27, %28 : vector<4x1xf32>
    %30 = vector.broadcast %29 : vector<4x1xf32> to vector<4x256xf32>
    %31 = arith.mulf %1, %30 : vector<4x256xf32>
    %c0_19 = arith.constant 0 : index
    %c0_20 = arith.constant 0 : index
    %c0_21 = arith.constant 0 : index
    %32 = vector.load %arg6[%c0_19, %c0_20, %c0_21] : memref<1x4x256xf32, #tpu.memory_space<vmem>>, vector<1x4x256xf32>
    %33 = vector.shape_cast %32 : vector<1x4x256xf32> to vector<4x256xf32>
    %34 = vector.shape_cast %31 : vector<4x256xf32> to vector<1x4x256xf32>
    tpu.vector_store %arg6[%c0_19, %c0_20, %c0_21], %34 {strides = array<i32>} : memref<1x4x256xf32, #tpu.memory_space<vmem>>, vector<1x4x256xf32>,
    return
  }
  func.func @transform_0(%arg0: i32) -> (i32, i32, i32) {
    %c0_i32 = arith.constant 0 : i32
    %c0_i32_0 = arith.constant 0 : i32
    %c0_i32_1 = arith.constant 0 : i32
    return %arg0, %c0_i32, %c0_i32_0 : i32, i32, i32
  }
  func.func @transform_1(%arg0: i32) -> (i32, i32) {
    %c0_i32 = arith.constant 0 : i32
    %c0_i32_0 = arith.constant 0 : i32
    %c0_i32_1 = arith.constant 0 : i32
    return %c0_i32, %c0_i32_0 : i32, i32
  }
  func.func @transform_2(%arg0: i32) -> (i32, i32) {
    %c0_i32 = arith.constant 0 : i32
    %c0_i32_0 = arith.constant 0 : i32
    %c0_i32_1 = arith.constant 0 : i32
    return %c0_i32, %c0_i32_0 : i32, i32
  }
  func.func @transform_3(%arg0: i32) -> (i32, i32) {
    %c0_i32 = arith.constant 0 : i32
    %c0_i32_0 = arith.constant 0 : i32
    %c0_i32_1 = arith.constant 0 : i32
    return %c0_i32, %c0_i32_0 : i32, i32
  }
  func.func @transform_4(%arg0: i32) -> (i32, i32) {
    %c0_i32 = arith.constant 0 : i32
    %c0_i32_0 = arith.constant 0 : i32
    %c0_i32_1 = arith.constant 0 : i32
    return %c0_i32, %c0_i32_0 : i32, i32
  }
  func.func @transform_5(%arg0: i32) -> (i32, i32, i32) {
    %c0_i32 = arith.constant 0 : i32
    %c0_i32_0 = arith.constant 0 : i32
    %c0_i32_1 = arith.constant 0 : i32
    return %arg0, %c0_i32, %c0_i32_0 : i32, i32, i32
  }
}

</mosaic_0001>

<bundles_post_ra>
// kernel: ca_forward.1
= control target key start
LH: loop header
LB: loop body
LE: loop exit
PB: predicated region body
PF: predicated region fallthrough
CT: control target
= control target key end

     0   :  { %s654_s18 = smov 0   ;;  %s703_s0 = inlined_call_operand.vmem [shape: f32[2,4,256], index: 0, kind: input, shape index: {}]   ;;  %s704_s1 = inlined_call_operand.vmem [shape: f32[2,4], index: 1, kind: input, shape index: {}]   ;;  %s705_s2 = inlined_call_operand.vmem [shape: f32[2,1], index: 2, kind: input, shape index: {}]   ;;  %s706_s3 = inlined_call_operand.vmem [shape: f32[4,2], index: 3, kind: input, shape index: {}]   ;;  %s707_s4 = inlined_call_operand.vmem [shape: f32[4,1], index: 4, kind: input, shape index: {}]   ;;  %s708_s5 = inlined_call_operand.vmem [shape: f32[2,4,256], index: 5, kind: output, shape index: {}]  }
   0x1 LB: > { %s552_s19 = sadd.s32 4294967295, %s618_s18   ;;  %p556_p0 = scmp.ge.s32.totalorder %s618_s18, 1  ;;  %s618_s18 = sphi %s654_s18, %s15_s18  }
   0x2   : > { %p187_p1 = scmp.lt.s32.totalorder %s618_s18, 3 }
   0x4   : > { %p188_p2 = pnand %p556_p0, %p187_p1 }
   0x5   : > { %p215_p3 = scmp.lt.s32.totalorder (!%p188_p2), %s552_s19, 1 }
   0x6   : > { %191 = sbr.rel (%p188_p2) target bundleno = 719 (0x2cf), region = 40 }
   0xb   : > { %s710_s19 = smov (!%p215_p3, %s552_s19), 1  ;;  %vm229_vm0 = vcmask 1043456   ;;  %v620_v8 = vmov 0.0   ;;  %vm621_vm1 = vmmov 0   ;;  %v241_v11 = vld [vmem:[%s704_s1] sm:$0x3]  ;;  %v490_v36 = vlaneseq }
   0xc   : > { %s570_s20 = sshll.u32 %s710_s19, 3  ;;  %578 = vmatprep.subr.mxu0 %v620_v8  ;;  %583 = vmatprep.subr.mxu1 %v620_v8  ;;  %vm245_vm2 = vcmask 31744   ;;  %v242_v13 = vld [vmem:[%s705_s2] sm:$0x3]  ;;  %vm403_vm3 = vcmask 1041408   ;;  %vm399_vm4 = vcmask 15360  }
   0xd   : > { %s219_s23 = scalar_lea.vmem %s703_s0, %s570_s20  ;;  %580 = vmatprep.mubr.msk.f32.mxu0 %vm621_vm1, %v620_v8  ;;  %585 = vmatprep.mubr.msk.f32.mxu1 %vm621_vm1, %v620_v8  ;;  %v243_v23 = vld [vmem:[%s706_s3] sm:$0xf]  ;;  %v622_v24 = vmov 0   ;;  %v623_v34 = vmov 839922192   ;;  %v491_v38 = vshrl.u32 %v490_v36, 7  ;;  %s224_s9 = scalar_lea.vmem %s708_s5, %s570_s20 }
   0xe   : > { %v670_v0 = vld [vmem:[%s219_s23] sm:$0xff]  ;;  %605 = vset.pattern.permute.xlu1 %v622_v24  ;;  %606 = vset.pattern.permute.xlu0 %v622_v24  ;;  %v488_v35 = vunpack.c.l.s4 %v623_v34 }
   0xf   : > { %v227_v1 = vcombine.high %v670_v0, %v670_v0  ;;  %v230_v2 = vsel %vm229_vm0, %v670_v0, 0.0  ;;  %v236_v4 = vsel %vm229_vm0, %v670_v0, -inf  ;;  %v244_v25 = vld [vmem:[%s707_s4] sm:$0xf] }
  0x10   : > { %v398_v26 = vmul.f32 2.0, %v244_v25  ;;  %v489_v37 = vunpack.c.0.s8 %v488_v35 }
  0x11   : > { %v231_v3 = vsel %vm229_vm0, %v227_v1, 0.0  ;;  %v237_v5 = vsel %vm229_vm0, %v227_v1, -inf }
  0x12   : > { %v232_v6 = vadd.f32 %v231_v3, %v230_v2  ;;  %v238_v7 = vmax.f32 %v236_v4, %v237_v5  ;;  %v492_v39 = vsub.s32 %v489_v37, %v491_v38 }
  0x14   : > { %233 = vadd.xlane.f32.xlu0 %v232_v6 }
  0x18   : > { %239 = vmax.xlane.f32.xlu0 %v238_v7 }
  0x9d   : > { %v234_v9 = vpop.xlane.xlu0 %233 }
  0x9e   : > { %v235_v10 = vmul.f32 0.00390625, %v234_v9 }
  0xa0   : > { %579 = vmatpush3.msk.msra.mxu0 %vm229_vm0, %v235_v10 }
  0xa1   : > { %581 = vmatmul.mubr.msk.f32.vlgmr.msra.gmra.mxu0 %vm245_vm2, %v241_v11  ;;  %v240_v12 = vpop.xlane.xlu0 %239  ;;  %588 = vmatprep.subr.mxu0 %v620_v8 }
  0xa2   : > { %584 = vmatpush3.msk.msra.mxu1 %vm229_vm0, %v240_v12  ;;  %590 = vmatprep.mubr.msk.f32.mxu0 %vm621_vm1, %v620_v8 }
  0xa3   : > { %586 = vmatmul.mubr.msk.f32.vlgmr.msra.gmra.mxu1 %vm245_vm2, %v241_v11 }
 0x161   : > { %v318_v14 = vpop.f32.mrf.mxu0 }
 0x162   : > { %v319_v15 = vadd.f32 %v318_v14, %v242_v13 }
 0x163   : > { %v582_v16 = vpop.f32.mrf.mxu0  ;;  %v392_v17 = vpop.f32.mrf.mxu1 }
 0x164   : > { %v322_v18 = vmax.f32 %v319_v15, 0.0  ;;  %v393_v19 = vadd.f32 %v392_v17, %v242_v13 }
 0x165   : > { %v587_v20 = vpop.f32.mrf.mxu1 }
 0x166   : > { %v396_v21 = vmax.f32 %v393_v19, 0.0 }
 0x168   : > { %v397_v22 = vadd.f32 %v396_v21, %v322_v18 }
 0x16a   : > { %589 = vmatpush3.msk.msra.mxu0 %vm403_vm3, %v397_v22 }
 0x16b   : > { %591 = vmatmul.mubr.msk.f32.vlgmr.msra.gmra.mxu0 %vm399_vm4, %v243_v23 }
 0x22b   : > { %v473_v27 = vpop.f32.mrf.mxu0 }
 0x22c   : > { %v474_v28 = vadd.f32 %v473_v27, %v398_v26 }
 0x22d   : > { %v592_v29 = vpop.f32.mrf.mxu0 }
 0x22e   : > { %v567_v30 = vmul.f32 -1.442695, %v474_v28 }
 0x230   : > { %608 = vpow2.f32 %v567_v30 }
 0x23d   : > { %v609_v31 = vpop.eup %608 }
 0x23e   : > { %v480_v32 = vadd.f32 1.0, %v609_v31 }
 0x240   : > { %610 = vrcp.f32 %v480_v32 }
 0x24d   : > { %v611_v33 = vpop.eup %610 }
 0x24e   : > { %485 = vperm.xlu1 %605, %v611_v33  }
 0x2c9   : > { %v486_v40 = vpop.permute.xlu1 %485 }
 0x2ca   : > { %v493_v41 = vrot.slane %v486_v40, %v492_v39 }
 0x2cc   : > { %v495_v42 = vmul.f32 %v493_v41, %v670_v0 }
 0x2ce   : > { %496 = vst [vmem:[%s224_s9] sm:$0xff] %v495_v42 }
 0x2cf PF: > { %s15_s18 = sadd.s32 1, %s618_s18  }
 0x2d0   : > { %p12_p4 = scmp.ge.s32.totalorder %s15_s18, 4  }
 0x2d2   :  { %14 = sbr.rel (!%p12_p4) target bundleno = 1 (0x1), region = 70 }

</bundles_post_ra>
